<compile_context>
chip_gen: v7x
topology: tpu7x:2x2x1
jax: 0.10.0
libtpu: 0.0.40
codegen_flags: <defaults>
</compile_context>

<pallas_src>
import jax
import jax.numpy as jnp
from jax.experimental import pallas as pl
from jax.experimental.pallas import tpu as pltpu

HIDDEN = 20
LANES = 128


def mlp_kernel(x_ref, w1_ref, b1_ref, w2_ref, b2_ref, o_ref):
    """y = b2 + sum_j w2[j] * relu(w1[j]*x + b1[j]) — pure VPU, no MXU."""
    x = x_ref[...]  # (TM, 128) lane-dense batch tile

    # Hoist all 41 SMEM scalar reads once per grid step.
    w1 = [w1_ref[j] for j in range(HIDDEN)]
    b1 = [b1_ref[j] for j in range(HIDDEN)]
    w2 = [w2_ref[j] for j in range(HIDDEN)]
    b2 = b2_ref[0]

    # Two independent accumulation chains for ILP; combined (plus b2) at the end.
    acc0 = jnp.zeros(x.shape, dtype=jnp.float32)
    acc1 = jnp.zeros(x.shape, dtype=jnp.float32)
    for j in range(HIDDEN):  # statically unrolled: 20 * ~5 VALU ops per vreg
        h = jnp.maximum(x * w1[j] + b1[j], 0.0)
        if j % 2 == 0:
            acc0 = acc0 + w2[j] * h
        else:
            acc1 = acc1 + w2[j] * h
    o_ref[...] = ((acc0 + acc1) + b2).astype(o_ref.dtype)


def _next_pow2(v: int) -> int:
    p = 1
    while p < v:
        p *= 2
    return p


def net_forward(x, w1, b1, w2, b2, *, tm=None):
    """Forward pass of Net: (N, 1) -> (N, 1), batch mapped onto the lane axis."""
    n = x.shape[0]

    # Tiny weights -> flat 1-D SMEM-friendly vectors (41 floats total).
    w1f = jnp.ravel(w1).astype(jnp.float32)   # (20,)
    b1f = jnp.ravel(b1).astype(jnp.float32)   # (20,)
    w2f = jnp.ravel(w2).astype(jnp.float32)   # (20,)
    b2f = jnp.ravel(b2).astype(jnp.float32)   # (1,)

    if tm is None:
        rows_needed = -(-n // LANES)
        # Largest power-of-two sublane tile up to 1024 rows.  One (1024, 128)
        # f32 tile is 512 KiB; double-buffered in + out is ~2 MiB — far under
        # every chip's VMEM budget, and big enough to amortize the ~0.35 µs
        # per-grid-step overhead.
        tm = min(1024, max(8, _next_pow2(rows_needed)))

    block = tm * LANES
    n_pad = -(-n // block) * block
    rows = n_pad // LANES
    grid = (rows // tm,)

    # Lane-dense layout: batch on the 128-lane axis; padded rows dropped after.
    x_lane = jnp.pad(jnp.ravel(x), (0, n_pad - n)).reshape(rows, LANES)

    smem = pl.BlockSpec(memory_space=pltpu.MemorySpace.SMEM)
    out2d = pl.pallas_call(
        mlp_kernel,
        out_shape=jax.ShapeDtypeStruct((rows, LANES), x.dtype),
        grid=grid,
        in_specs=[
            pl.BlockSpec((tm, LANES), lambda i: (i, 0)),   # x: lane-dense tile
            smem, smem, smem, smem,                        # w1, b1, w2, b2
        ],
        out_specs=pl.BlockSpec((tm, LANES), lambda i: (i, 0)),
        compiler_params=pltpu.CompilerParams(
            dimension_semantics=("parallel",)),            # v7x dual-TC sharding
    )(x_lane, w1f, b1f, w2f, b2f)

    return out2d.reshape(n_pad, 1)[:n]


def init_params(key):
    # Deterministic init mimicking torch.nn.Linear default U(-1/sqrt(fan_in), +).
    k1, k2, k3, k4 = jax.random.split(key, 4)
    bound1 = 1.0                     # fan_in = 1
    bound2 = 1.0 / jnp.sqrt(20.0)    # fan_in = 20
    w1 = jax.random.uniform(k1, (1, HIDDEN), jnp.float32, -bound1, bound1)  # (in, out)
    b1 = jax.random.uniform(k2, (HIDDEN,), jnp.float32, -bound1, bound1)
    w2 = jax.random.uniform(k3, (HIDDEN, 1), jnp.float32, -bound2, bound2)  # (in, out)
    b2 = jax.random.uniform(k4, (1,), jnp.float32, -bound2, bound2)
    return w1, b1, w2, b2


def reference(x, w1, b1, w2, b2):
    return jnp.maximum(x @ w1 + b1[None, :], 0.0) @ w2 + b2[None, :]


if __name__ == "__main__":
    key = jax.random.PRNGKey(0)
    kx, kp, kx2 = jax.random.split(key, 3)
    w1, b1, w2, b2 = init_params(kp)

    # Small-batch check (matches the nn.Module: scalar in -> 20 hidden -> scalar out).
    x = jax.random.normal(kx, (8, 1), jnp.float32)
    out = net_forward(x, w1, b1, w2, b2)
    jax.block_until_ready(out)
    ref = reference(x, w1, b1, w2, b2)
    assert out.shape == (8, 1)
    assert jnp.allclose(out, ref, atol=1e-5, rtol=1e-5), "small-batch mismatch"

    # Multi-tile grid path: 3000 elements -> 3 grid steps of (8, 128) tiles.
    x_big = jax.random.normal(kx2, (3000, 1), jnp.float32)
    out_big = net_forward(x_big, w1, b1, w2, b2, tm=8)
    jax.block_until_ready(out_big)
    ref_big = reference(x_big, w1, b1, w2, b2)
    assert out_big.shape == (3000, 1)
    assert jnp.allclose(out_big, ref_big, atol=1e-5, rtol=1e-5), "big-batch mismatch"

    print("KERNEL_OK")
</pallas_src>

<mosaic_0001>
module attributes {stable_mosaic.version = 11 : i64} {
  func.func @mlp_kernel(%arg0: i32, %arg1: memref<8x128xf32, #tpu.memory_space<vmem>>, %arg2: memref<20xf32, #tpu.memory_space<smem>>, %arg3: memref<20xf32, #tpu.memory_space<smem>>, %arg4: memref<20xf32, #tpu.memory_space<smem>>, %arg5: memref<1xf32, #tpu.memory_space<smem>>, %arg6: memref<8x128xf32, #tpu.memory_space<vmem>>) attributes {dimension_semantics = [#tpu.dimension_semantics<parallel>], iteration_bounds = array<i64: 1>, scalar_prefetch = 0 : i64, scratch_operands = 0 : i64, tpu.core_type = #tpu.core_type<tc>, window_params = [{transform_indices = @transform_0, window_bounds = array<i64: 8, 128>}, {transform_indices = @transform_1, window_bounds = array<i64: 20>}, {transform_indices = @transform_2, window_bounds = array<i64: 20>}, {transform_indices = @transform_3, window_bounds = array<i64: 20>}, {transform_indices = @transform_4, window_bounds = array<i64: 1>}, {transform_indices = @transform_5, window_bounds = array<i64: 8, 128>}]} {
    %c0 = arith.constant 0 : index
    %c0_0 = arith.constant 0 : index
    %0 = vector.load %arg1[%c0, %c0_0] : memref<8x128xf32, #tpu.memory_space<vmem>>, vector<8x128xf32>
    %c0_1 = arith.constant 0 : index
    %1 = memref.load %arg2[%c0_1] : memref<20xf32, #tpu.memory_space<smem>>
    %c1 = arith.constant 1 : index
    %2 = memref.load %arg2[%c1] : memref<20xf32, #tpu.memory_space<smem>>
    %c2 = arith.constant 2 : index
    %3 = memref.load %arg2[%c2] : memref<20xf32, #tpu.memory_space<smem>>
    %c3 = arith.constant 3 : index
    %4 = memref.load %arg2[%c3] : memref<20xf32, #tpu.memory_space<smem>>
    %c4 = arith.constant 4 : index
    %5 = memref.load %arg2[%c4] : memref<20xf32, #tpu.memory_space<smem>>
    %c5 = arith.constant 5 : index
    %6 = memref.load %arg2[%c5] : memref<20xf32, #tpu.memory_space<smem>>
    %c6 = arith.constant 6 : index
    %7 = memref.load %arg2[%c6] : memref<20xf32, #tpu.memory_space<smem>>
    %c7 = arith.constant 7 : index
    %8 = memref.load %arg2[%c7] : memref<20xf32, #tpu.memory_space<smem>>
    %c8 = arith.constant 8 : index
    %9 = memref.load %arg2[%c8] : memref<20xf32, #tpu.memory_space<smem>>
    %c9 = arith.constant 9 : index
    %10 = memref.load %arg2[%c9] : memref<20xf32, #tpu.memory_space<smem>>
    %c10 = arith.constant 10 : index
    %11 = memref.load %arg2[%c10] : memref<20xf32, #tpu.memory_space<smem>>
    %c11 = arith.constant 11 : index
    %12 = memref.load %arg2[%c11] : memref<20xf32, #tpu.memory_space<smem>>
    %c12 = arith.constant 12 : index
    %13 = memref.load %arg2[%c12] : memref<20xf32, #tpu.memory_space<smem>>
    %c13 = arith.constant 13 : index
    %14 = memref.load %arg2[%c13] : memref<20xf32, #tpu.memory_space<smem>>
    %c14 = arith.constant 14 : index
    %15 = memref.load %arg2[%c14] : memref<20xf32, #tpu.memory_space<smem>>
    %c15 = arith.constant 15 : index
    %16 = memref.load %arg2[%c15] : memref<20xf32, #tpu.memory_space<smem>>
    %c16 = arith.constant 16 : index
    %17 = memref.load %arg2[%c16] : memref<20xf32, #tpu.memory_space<smem>>
    %c17 = arith.constant 17 : index
    %18 = memref.load %arg2[%c17] : memref<20xf32, #tpu.memory_space<smem>>
    %c18 = arith.constant 18 : index
    %19 = memref.load %arg2[%c18] : memref<20xf32, #tpu.memory_space<smem>>
    %c19 = arith.constant 19 : index
    %20 = memref.load %arg2[%c19] : memref<20xf32, #tpu.memory_space<smem>>
    %c0_2 = arith.constant 0 : index
    %21 = memref.load %arg3[%c0_2] : memref<20xf32, #tpu.memory_space<smem>>
    %c1_3 = arith.constant 1 : index
    %22 = memref.load %arg3[%c1_3] : memref<20xf32, #tpu.memory_space<smem>>
    %c2_4 = arith.constant 2 : index
    %23 = memref.load %arg3[%c2_4] : memref<20xf32, #tpu.memory_space<smem>>
    %c3_5 = arith.constant 3 : index
    %24 = memref.load %arg3[%c3_5] : memref<20xf32, #tpu.memory_space<smem>>
    %c4_6 = arith.constant 4 : index
    %25 = memref.load %arg3[%c4_6] : memref<20xf32, #tpu.memory_space<smem>>
    %c5_7 = arith.constant 5 : index
    %26 = memref.load %arg3[%c5_7] : memref<20xf32, #tpu.memory_space<smem>>
    %c6_8 = arith.constant 6 : index
    %27 = memref.load %arg3[%c6_8] : memref<20xf32, #tpu.memory_space<smem>>
    %c7_9 = arith.constant 7 : index
    %28 = memref.load %arg3[%c7_9] : memref<20xf32, #tpu.memory_space<smem>>
    %c8_10 = arith.constant 8 : index
    %29 = memref.load %arg3[%c8_10] : memref<20xf32, #tpu.memory_space<smem>>
    %c9_11 = arith.constant 9 : index
    %30 = memref.load %arg3[%c9_11] : memref<20xf32, #tpu.memory_space<smem>>
    %c10_12 = arith.constant 10 : index
    %31 = memref.load %arg3[%c10_12] : memref<20xf32, #tpu.memory_space<smem>>
    %c11_13 = arith.constant 11 : index
    %32 = memref.load %arg3[%c11_13] : memref<20xf32, #tpu.memory_space<smem>>
    %c12_14 = arith.constant 12 : index
    %33 = memref.load %arg3[%c12_14] : memref<20xf32, #tpu.memory_space<smem>>
    %c13_15 = arith.constant 13 : index
    %34 = memref.load %arg3[%c13_15] : memref<20xf32, #tpu.memory_space<smem>>
    %c14_16 = arith.constant 14 : index
    %35 = memref.load %arg3[%c14_16] : memref<20xf32, #tpu.memory_space<smem>>
    %c15_17 = arith.constant 15 : index
    %36 = memref.load %arg3[%c15_17] : memref<20xf32, #tpu.memory_space<smem>>
    %c16_18 = arith.constant 16 : index
    %37 = memref.load %arg3[%c16_18] : memref<20xf32, #tpu.memory_space<smem>>
    %c17_19 = arith.constant 17 : index
    %38 = memref.load %arg3[%c17_19] : memref<20xf32, #tpu.memory_space<smem>>
    %c18_20 = arith.constant 18 : index
    %39 = memref.load %arg3[%c18_20] : memref<20xf32, #tpu.memory_space<smem>>
    %c19_21 = arith.constant 19 : index
    %40 = memref.load %arg3[%c19_21] : memref<20xf32, #tpu.memory_space<smem>>
    %c0_22 = arith.constant 0 : index
    %41 = memref.load %arg4[%c0_22] : memref<20xf32, #tpu.memory_space<smem>>
    %c1_23 = arith.constant 1 : index
    %42 = memref.load %arg4[%c1_23] : memref<20xf32, #tpu.memory_space<smem>>
    %c2_24 = arith.constant 2 : index
    %43 = memref.load %arg4[%c2_24] : memref<20xf32, #tpu.memory_space<smem>>
    %c3_25 = arith.constant 3 : index
    %44 = memref.load %arg4[%c3_25] : memref<20xf32, #tpu.memory_space<smem>>
    %c4_26 = arith.constant 4 : index
    %45 = memref.load %arg4[%c4_26] : memref<20xf32, #tpu.memory_space<smem>>
    %c5_27 = arith.constant 5 : index
    %46 = memref.load %arg4[%c5_27] : memref<20xf32, #tpu.memory_space<smem>>
    %c6_28 = arith.constant 6 : index
    %47 = memref.load %arg4[%c6_28] : memref<20xf32, #tpu.memory_space<smem>>
    %c7_29 = arith.constant 7 : index
    %48 = memref.load %arg4[%c7_29] : memref<20xf32, #tpu.memory_space<smem>>
    %c8_30 = arith.constant 8 : index
    %49 = memref.load %arg4[%c8_30] : memref<20xf32, #tpu.memory_space<smem>>
    %c9_31 = arith.constant 9 : index
    %50 = memref.load %arg4[%c9_31] : memref<20xf32, #tpu.memory_space<smem>>
    %c10_32 = arith.constant 10 : index
    %51 = memref.load %arg4[%c10_32] : memref<20xf32, #tpu.memory_space<smem>>
    %c11_33 = arith.constant 11 : index
    %52 = memref.load %arg4[%c11_33] : memref<20xf32, #tpu.memory_space<smem>>
    %c12_34 = arith.constant 12 : index
    %53 = memref.load %arg4[%c12_34] : memref<20xf32, #tpu.memory_space<smem>>
    %c13_35 = arith.constant 13 : index
    %54 = memref.load %arg4[%c13_35] : memref<20xf32, #tpu.memory_space<smem>>
    %c14_36 = arith.constant 14 : index
    %55 = memref.load %arg4[%c14_36] : memref<20xf32, #tpu.memory_space<smem>>
    %c15_37 = arith.constant 15 : index
    %56 = memref.load %arg4[%c15_37] : memref<20xf32, #tpu.memory_space<smem>>
    %c16_38 = arith.constant 16 : index
    %57 = memref.load %arg4[%c16_38] : memref<20xf32, #tpu.memory_space<smem>>
    %c17_39 = arith.constant 17 : index
    %58 = memref.load %arg4[%c17_39] : memref<20xf32, #tpu.memory_space<smem>>
    %c18_40 = arith.constant 18 : index
    %59 = memref.load %arg4[%c18_40] : memref<20xf32, #tpu.memory_space<smem>>
    %c19_41 = arith.constant 19 : index
    %60 = memref.load %arg4[%c19_41] : memref<20xf32, #tpu.memory_space<smem>>
    %c0_42 = arith.constant 0 : index
    %61 = memref.load %arg5[%c0_42] : memref<1xf32, #tpu.memory_space<smem>>
    %cst = arith.constant 0.000000e+00 : f32
    %62 = vector.broadcast %cst : f32 to vector<8x128xf32>
    %cst_43 = arith.constant 0.000000e+00 : f32
    %63 = vector.broadcast %cst_43 : f32 to vector<8x128xf32>
    %64 = vector.broadcast %1 : f32 to vector<8x128xf32>
    %65 = arith.mulf %0, %64 : vector<8x128xf32>
    %66 = vector.broadcast %21 : f32 to vector<8x128xf32>
    %67 = arith.addf %65, %66 : vector<8x128xf32>
    %cst_44 = arith.constant 0.000000e+00 : f32
    %68 = vector.broadcast %cst_44 : f32 to vector<8x128xf32>
    %69 = arith.maximumf %67, %68 : vector<8x128xf32>
    %70 = vector.broadcast %41 : f32 to vector<8x128xf32>
    %71 = arith.mulf %70, %69 : vector<8x128xf32>
    %72 = arith.addf %62, %71 : vector<8x128xf32>
    %73 = vector.broadcast %2 : f32 to vector<8x128xf32>
    %74 = arith.mulf %0, %73 : vector<8x128xf32>
    %75 = vector.broadcast %22 : f32 to vector<8x128xf32>
    %76 = arith.addf %74, %75 : vector<8x128xf32>
    %cst_45 = arith.constant 0.000000e+00 : f32
    %77 = vector.broadcast %cst_45 : f32 to vector<8x128xf32>
    %78 = arith.maximumf %76, %77 : vector<8x128xf32>
    %79 = vector.broadcast %42 : f32 to vector<8x128xf32>
    %80 = arith.mulf %79, %78 : vector<8x128xf32>
    %81 = arith.addf %63, %80 : vector<8x128xf32>
    %82 = vector.broadcast %3 : f32 to vector<8x128xf32>
    %83 = arith.mulf %0, %82 : vector<8x128xf32>
    %84 = vector.broadcast %23 : f32 to vector<8x128xf32>
    %85 = arith.addf %83, %84 : vector<8x128xf32>
    %cst_46 = arith.constant 0.000000e+00 : f32
    %86 = vector.broadcast %cst_46 : f32 to vector<8x128xf32>
    %87 = arith.maximumf %85, %86 : vector<8x128xf32>
    %88 = vector.broadcast %43 : f32 to vector<8x128xf32>
    %89 = arith.mulf %88, %87 : vector<8x128xf32>
    %90 = arith.addf %72, %89 : vector<8x128xf32>
    %91 = vector.broadcast %4 : f32 to vector<8x128xf32>
    %92 = arith.mulf %0, %91 : vector<8x128xf32>
    %93 = vector.broadcast %24 : f32 to vector<8x128xf32>
    %94 = arith.addf %92, %93 : vector<8x128xf32>
    %cst_47 = arith.constant 0.000000e+00 : f32
    %95 = vector.broadcast %cst_47 : f32 to vector<8x128xf32>
    %96 = arith.maximumf %94, %95 : vector<8x128xf32>
    %97 = vector.broadcast %44 : f32 to vector<8x128xf32>
    %98 = arith.mulf %97, %96 : vector<8x128xf32>
    %99 = arith.addf %81, %98 : vector<8x128xf32>
    %100 = vector.broadcast %5 : f32 to vector<8x128xf32>
    %101 = arith.mulf %0, %100 : vector<8x128xf32>
    %102 = vector.broadcast %25 : f32 to vector<8x128xf32>
    %103 = arith.addf %101, %102 : vector<8x128xf32>
    %cst_48 = arith.constant 0.000000e+00 : f32
    %104 = vector.broadcast %cst_48 : f32 to vector<8x128xf32>
    %105 = arith.maximumf %103, %104 : vector<8x128xf32>
    %106 = vector.broadcast %45 : f32 to vector<8x128xf32>
    %107 = arith.mulf %106, %105 : vector<8x128xf32>
    %108 = arith.addf %90, %107 : vector<8x128xf32>
    %109 = vector.broadcast %6 : f32 to vector<8x128xf32>
    %110 = arith.mulf %0, %109 : vector<8x128xf32>
    %111 = vector.broadcast %26 : f32 to vector<8x128xf32>
    %112 = arith.addf %110, %111 : vector<8x128xf32>
    %cst_49 = arith.constant 0.000000e+00 : f32
    %113 = vector.broadcast %cst_49 : f32 to vector<8x128xf32>
    %114 = arith.maximumf %112, %113 : vector<8x128xf32>
    %115 = vector.broadcast %46 : f32 to vector<8x128xf32>
    %116 = arith.mulf %115, %114 : vector<8x128xf32>
    %117 = arith.addf %99, %116 : vector<8x128xf32>
    %118 = vector.broadcast %7 : f32 to vector<8x128xf32>
    %119 = arith.mulf %0, %118 : vector<8x128xf32>
    %120 = vector.broadcast %27 : f32 to vector<8x128xf32>
    %121 = arith.addf %119, %120 : vector<8x128xf32>
    %cst_50 = arith.constant 0.000000e+00 : f32
    %122 = vector.broadcast %cst_50 : f32 to vector<8x128xf32>
    %123 = arith.maximumf %121, %122 : vector<8x128xf32>
    %124 = vector.broadcast %47 : f32 to vector<8x128xf32>
    %125 = arith.mulf %124, %123 : vector<8x128xf32>
    %126 = arith.addf %108, %125 : vector<8x128xf32>
    %127 = vector.broadcast %8 : f32 to vector<8x128xf32>
    %128 = arith.mulf %0, %127 : vector<8x128xf32>
    %129 = vector.broadcast %28 : f32 to vector<8x128xf32>
    %130 = arith.addf %128, %129 : vector<8x128xf32>
    %cst_51 = arith.constant 0.000000e+00 : f32
    %131 = vector.broadcast %cst_51 : f32 to vector<8x128xf32>
    %132 = arith.maximumf %130, %131 : vector<8x128xf32>
    %133 = vector.broadcast %48 : f32 to vector<8x128xf32>
    %134 = arith.mulf %133, %132 : vector<8x128xf32>
    %135 = arith.addf %117, %134 : vector<8x128xf32>
    %136 = vector.broadcast %9 : f32 to vector<8x128xf32>
    %137 = arith.mulf %0, %136 : vector<8x128xf32>
    %138 = vector.broadcast %29 : f32 to vector<8x128xf32>
    %139 = arith.addf %137, %138 : vector<8x128xf32>
    %cst_52 = arith.constant 0.000000e+00 : f32
    %140 = vector.broadcast %cst_52 : f32 to vector<8x128xf32>
    %141 = arith.maximumf %139, %140 : vector<8x128xf32>
    %142 = vector.broadcast %49 : f32 to vector<8x128xf32>
    %143 = arith.mulf %142, %141 : vector<8x128xf32>
    %144 = arith.addf %126, %143 : vector<8x128xf32>
    %145 = vector.broadcast %10 : f32 to vector<8x128xf32>
    %146 = arith.mulf %0, %145 : vector<8x128xf32>
    %147 = vector.broadcast %30 : f32 to vector<8x128xf32>
    %148 = arith.addf %146, %147 : vector<8x128xf32>
    %cst_53 = arith.constant 0.000000e+00 : f32
    %149 = vector.broadcast %cst_53 : f32 to vector<8x128xf32>
    %150 = arith.maximumf %148, %149 : vector<8x128xf32>
    %151 = vector.broadcast %50 : f32 to vector<8x128xf32>
    %152 = arith.mulf %151, %150 : vector<8x128xf32>
    %153 = arith.addf %135, %152 : vector<8x128xf32>
    %154 = vector.broadcast %11 : f32 to vector<8x128xf32>
    %155 = arith.mulf %0, %154 : vector<8x128xf32>
    %156 = vector.broadcast %31 : f32 to vector<8x128xf32>
    %157 = arith.addf %155, %156 : vector<8x128xf32>
    %cst_54 = arith.constant 0.000000e+00 : f32
    %158 = vector.broadcast %cst_54 : f32 to vector<8x128xf32>
    %159 = arith.maximumf %157, %158 : vector<8x128xf32>
    %160 = vector.broadcast %51 : f32 to vector<8x128xf32>
    %161 = arith.mulf %160, %159 : vector<8x128xf32>
    %162 = arith.addf %144, %161 : vector<8x128xf32>
    %163 = vector.broadcast %12 : f32 to vector<8x128xf32>
    %164 = arith.mulf %0, %163 : vector<8x128xf32>
    %165 = vector.broadcast %32 : f32 to vector<8x128xf32>
    %166 = arith.addf %164, %165 : vector<8x128xf32>
    %cst_55 = arith.constant 0.000000e+00 : f32
    %167 = vector.broadcast %cst_55 : f32 to vector<8x128xf32>
    %168 = arith.maximumf %166, %167 : vector<8x128xf32>
    %169 = vector.broadcast %52 : f32 to vector<8x128xf32>
    %170 = arith.mulf %169, %168 : vector<8x128xf32>
    %171 = arith.addf %153, %170 : vector<8x128xf32>
    %172 = vector.broadcast %13 : f32 to vector<8x128xf32>
    %173 = arith.mulf %0, %172 : vector<8x128xf32>
    %174 = vector.broadcast %33 : f32 to vector<8x128xf32>
    %175 = arith.addf %173, %174 : vector<8x128xf32>
    %cst_56 = arith.constant 0.000000e+00 : f32
    %176 = vector.broadcast %cst_56 : f32 to vector<8x128xf32>
    %177 = arith.maximumf %175, %176 : vector<8x128xf32>
    %178 = vector.broadcast %53 : f32 to vector<8x128xf32>
    %179 = arith.mulf %178, %177 : vector<8x128xf32>
    %180 = arith.addf %162, %179 : vector<8x128xf32>
    %181 = vector.broadcast %14 : f32 to vector<8x128xf32>
    %182 = arith.mulf %0, %181 : vector<8x128xf32>
    %183 = vector.broadcast %34 : f32 to vector<8x128xf32>
    %184 = arith.addf %182, %183 : vector<8x128xf32>
    %cst_57 = arith.constant 0.000000e+00 : f32
    %185 = vector.broadcast %cst_57 : f32 to vector<8x128xf32>
    %186 = arith.maximumf %184, %185 : vector<8x128xf32>
    %187 = vector.broadcast %54 : f32 to vector<8x128xf32>
    %188 = arith.mulf %187, %186 : vector<8x128xf32>
    %189 = arith.addf %171, %188 : vector<8x128xf32>
    %190 = vector.broadcast %15 : f32 to vector<8x128xf32>
    %191 = arith.mulf %0, %190 : vector<8x128xf32>
    %192 = vector.broadcast %35 : f32 to vector<8x128xf32>
    %193 = arith.addf %191, %192 : vector<8x128xf32>
    %cst_58 = arith.constant 0.000000e+00 : f32
    %194 = vector.broadcast %cst_58 : f32 to vector<8x128xf32>
    %195 = arith.maximumf %193, %194 : vector<8x128xf32>
    %196 = vector.broadcast %55 : f32 to vector<8x128xf32>
    %197 = arith.mulf %196, %195 : vector<8x128xf32>
    %198 = arith.addf %180, %197 : vector<8x128xf32>
    %199 = vector.broadcast %16 : f32 to vector<8x128xf32>
    %200 = arith.mulf %0, %199 : vector<8x128xf32>
    %201 = vector.broadcast %36 : f32 to vector<8x128xf32>
    %202 = arith.addf %200, %201 : vector<8x128xf32>
    %cst_59 = arith.constant 0.000000e+00 : f32
    %203 = vector.broadcast %cst_59 : f32 to vector<8x128xf32>
    %204 = arith.maximumf %202, %203 : vector<8x128xf32>
    %205 = vector.broadcast %56 : f32 to vector<8x128xf32>
    %206 = arith.mulf %205, %204 : vector<8x128xf32>
    %207 = arith.addf %189, %206 : vector<8x128xf32>
    %208 = vector.broadcast %17 : f32 to vector<8x128xf32>
    %209 = arith.mulf %0, %208 : vector<8x128xf32>
    %210 = vector.broadcast %37 : f32 to vector<8x128xf32>
    %211 = arith.addf %209, %210 : vector<8x128xf32>
    %cst_60 = arith.constant 0.000000e+00 : f32
    %212 = vector.broadcast %cst_60 : f32 to vector<8x128xf32>
    %213 = arith.maximumf %211, %212 : vector<8x128xf32>
    %214 = vector.broadcast %57 : f32 to vector<8x128xf32>
    %215 = arith.mulf %214, %213 : vector<8x128xf32>
    %216 = arith.addf %198, %215 : vector<8x128xf32>
    %217 = vector.broadcast %18 : f32 to vector<8x128xf32>
    %218 = arith.mulf %0, %217 : vector<8x128xf32>
    %219 = vector.broadcast %38 : f32 to vector<8x128xf32>
    %220 = arith.addf %218, %219 : vector<8x128xf32>
    %cst_61 = arith.constant 0.000000e+00 : f32
    %221 = vector.broadcast %cst_61 : f32 to vector<8x128xf32>
    %222 = arith.maximumf %220, %221 : vector<8x128xf32>
    %223 = vector.broadcast %58 : f32 to vector<8x128xf32>
    %224 = arith.mulf %223, %222 : vector<8x128xf32>
    %225 = arith.addf %207, %224 : vector<8x128xf32>
    %226 = vector.broadcast %19 : f32 to vector<8x128xf32>
    %227 = arith.mulf %0, %226 : vector<8x128xf32>
    %228 = vector.broadcast %39 : f32 to vector<8x128xf32>
    %229 = arith.addf %227, %228 : vector<8x128xf32>
    %cst_62 = arith.constant 0.000000e+00 : f32
    %230 = vector.broadcast %cst_62 : f32 to vector<8x128xf32>
    %231 = arith.maximumf %229, %230 : vector<8x128xf32>
    %232 = vector.broadcast %59 : f32 to vector<8x128xf32>
    %233 = arith.mulf %232, %231 : vector<8x128xf32>
    %234 = arith.addf %216, %233 : vector<8x128xf32>
    %235 = vector.broadcast %20 : f32 to vector<8x128xf32>
    %236 = arith.mulf %0, %235 : vector<8x128xf32>
    %237 = vector.broadcast %40 : f32 to vector<8x128xf32>
    %238 = arith.addf %236, %237 : vector<8x128xf32>
    %cst_63 = arith.constant 0.000000e+00 : f32
    %239 = vector.broadcast %cst_63 : f32 to vector<8x128xf32>
    %240 = arith.maximumf %238, %239 : vector<8x128xf32>
    %241 = vector.broadcast %60 : f32 to vector<8x128xf32>
    %242 = arith.mulf %241, %240 : vector<8x128xf32>
    %243 = arith.addf %225, %242 : vector<8x128xf32>
    %244 = arith.addf %234, %243 : vector<8x128xf32>
    %245 = vector.broadcast %61 : f32 to vector<8x128xf32>
    %246 = arith.addf %244, %245 : vector<8x128xf32>
    %c0_64 = arith.constant 0 : index
    %c0_65 = arith.constant 0 : index
    %247 = vector.load %arg6[%c0_64, %c0_65] : memref<8x128xf32, #tpu.memory_space<vmem>>, vector<8x128xf32>
    tpu.vector_store %arg6[%c0_64, %c0_65], %246 {strides = array<i32>} : memref<8x128xf32, #tpu.memory_space<vmem>>, vector<8x128xf32>,
    return
  }
  func.func @transform_0(%arg0: i32) -> (i32, i32) {
    %c0_i32 = arith.constant 0 : i32
    %c0_i32_0 = arith.constant 0 : i32
    return %arg0, %c0_i32 : i32, i32
  }
  func.func @transform_1(%arg0: i32) -> i32 {
    %c0_i32 = arith.constant 0 : i32
    %c0_i32_0 = arith.constant 0 : i32
    return %c0_i32 : i32
  }
  func.func @transform_2(%arg0: i32) -> i32 {
    %c0_i32 = arith.constant 0 : i32
    %c0_i32_0 = arith.constant 0 : i32
    return %c0_i32 : i32
  }
  func.func @transform_3(%arg0: i32) -> i32 {
    %c0_i32 = arith.constant 0 : i32
    %c0_i32_0 = arith.constant 0 : i32
    return %c0_i32 : i32
  }
  func.func @transform_4(%arg0: i32) -> i32 {
    %c0_i32 = arith.constant 0 : i32
    %c0_i32_0 = arith.constant 0 : i32
    return %c0_i32 : i32
  }
  func.func @transform_5(%arg0: i32) -> (i32, i32) {
    %c0_i32 = arith.constant 0 : i32
    %c0_i32_0 = arith.constant 0 : i32
    return %arg0, %c0_i32 : i32, i32
  }
}

</mosaic_0001>

<bundles_post_ra>
// kernel: tpu_custom_call.1
= control target key start
LH: loop header
LB: loop body
LE: loop exit
PB: predicated region body
PF: predicated region fallthrough
CT: control target
= control target key end

     0   :  { %11 = vsyncpa [#allocation4], 0  ;;  %s753_s0 = inlined_call_operand.hbm [shape: f32[8,128], index: 0, kind: input, shape index: {}]   ;;  %s754_s1 = inlined_call_operand.vmem [shape: f32[20], index: 1, kind: input, shape index: {}]   ;;  %s755_s2 = inlined_call_operand.vmem [shape: f32[20], index: 2, kind: input, shape index: {}]   ;;  %s756_s3 = inlined_call_operand.vmem [shape: f32[20], index: 3, kind: input, shape index: {}]   ;;  %s757_s4 = inlined_call_operand.<no memory space> [shape: f32[1], index: 4, kind: input, shape index: {}]   ;;  %s758_s5 = inlined_call_operand.hbm [shape: f32[8,128], index: 5, kind: output, shape index: {}]  }
   0x1   :  { %12 = vsyncpa [#allocation6], 0 }
   0x2   :  { %13 = vsyncpa [#allocation9], 0  ;;  %s41_s20 = sshll.u32 %s755_s2, 4  ;;  %s42_s20 = int_to_ptr.vmem [resolvable:$true] %s41_s20 }
   0x3   :  { %14 = vsyncpa [#allocation5], 0  ;;  %s375_s21 = scalar_lea.vmem %s42_s20, 16  ;;  %p380_p1 = scmp.lt.s32.totalorder %s42_s20, %s42_s20 }
   0x4   :  { %p376_p0 = scmp.ne.s32.totalorder %s42_s20, %s375_s21  ;;  %p381_p2 = scmp.lt.s32.totalorder %s375_s21, %s375_s21 }
   0x6   :  { %p382_p3 = por %p381_p2, %p380_p1 }
   0x8   :  { %p383_p4 = pnand %p382_p3, %p376_p0 }
   0xa   :  { %386 = shalt.err (!%p383_p4)
}
   0xb   :  { %s463_s22 = smov [#allocation8]   ;;  %s464_s23 = smov [#allocation3]  }
   0xc   :  { %44 = dma.vmem_to_smem %s42_s20, 16, %s463_s22, [#allocation9]  }
   0xd   :  { %s21_s24 = sshll.u32 %s464_s23, 4  ;;  %s31_s27 = sshll.u32 %s754_s1, 4  ;;  %s22_s24 = int_to_ptr.vmem [resolvable:$true] %s21_s24  ;;  %s32_s27 = int_to_ptr.vmem [resolvable:$true] %s31_s27 }
   0xe   :  { %s387_s29 = scalar_lea.hbm %s753_s0, 128 }
   0xf   :  { %p388_p5 = scmp.ne.s32.totalorder %s753_s0, %s387_s29  ;;  %p391_p6 = scmp.lt.u32.totalorder %s387_s29, %s753_s0 }
  0x11   :  { %p393_p7 = pnand %p391_p6, %p388_p5 }
  0x13   :  { %396 = shalt.err (!%p393_p7)
}
  0x14   :  { %s397_s9 = scalar_lea.vmem %s22_s24, 128  ;;  %p402_p9 = scmp.lt.s32.totalorder %s22_s24, %s22_s24 }
  0x15   :  { %p398_p8 = scmp.ne.s32.totalorder %s22_s24, %s397_s9  ;;  %p403_p10 = scmp.lt.s32.totalorder %s397_s9, %s397_s9 }
  0x17   :  { %p404_p11 = por %p403_p10, %p402_p9 }
  0x19   :  { %p405_p12 = pnand %p404_p11, %p398_p8 }
  0x1b   :  { %408 = shalt.err (!%p405_p12)
}
  0x1c   :  { %24 = dma.hbm_to_vmem [thread:$0]  %s753_s0, 128, %s22_s24, [#allocation4]  }
  0x1d   :  { %s51_s13 = sshll.u32 %s756_s3, 4  ;;  %s409_s14 = scalar_lea.vmem %s32_s27, 16  ;;  %s52_s13 = int_to_ptr.vmem [resolvable:$true] %s51_s13 }
  0x1e   :  { %p410_p13 = scmp.ne.s32.totalorder %s32_s27, %s409_s14  ;;  %p414_p0 = scmp.lt.s32.totalorder %s32_s27, %s32_s27 }
  0x1f   :  { %p415_p1 = scmp.lt.s32.totalorder %s409_s14, %s409_s14 }
  0x21   :  { %p416_p2 = por %p415_p1, %p414_p0 }
  0x23   :  { %p417_p3 = pnand %p416_p2, %p410_p13 }
  0x25   :  { %420 = shalt.err (!%p417_p3)
}
  0x26   :  { %s465_s15 = smov [#allocation7]   ;;  %s421_s16 = scalar_lea.vmem %s52_s13, 16 }
  0x27   :  { %34 = dma.vmem_to_smem %s32_s27, 16, %s465_s15, [#allocation6]  }
  0x28   :  { %p422_p4 = scmp.ne.s32.totalorder %s52_s13, %s421_s16  ;;  %p426_p5 = scmp.lt.s32.totalorder %s52_s13, %s52_s13 }
  0x29   :  { %p427_p6 = scmp.lt.s32.totalorder %s421_s16, %s421_s16 }
  0x2b   :  { %p428_p7 = por %p427_p6, %p426_p5 }
  0x2d   :  { %p429_p8 = pnand %p428_p7, %p422_p4 }
  0x2f   :  { %432 = shalt.err (!%p429_p8)
}
  0x30   :  { %s466_s0 = smov [#allocation10]  }
  0x31   :  { %54 = dma.vmem_to_smem %s52_s13, 16, %s466_s0, [#allocation9]  }
  0x32   :  { %455 = dma.done.wait [#allocation4], 128  }
  0x33   :  { %456 = vsyncadd [#allocation4], 4294967168 }
  0x34   :  { %457 = dma.done.wait [#allocation6], 16  }
  0x35   :  { %458 = vsyncadd [#allocation6], 4294967280 }
  0x36   :  { %459 = dma.done.wait [#allocation9], 32  }
  0x37   :  { %460 = vsyncadd [#allocation9], 4294967264 }
  0x38   :  { %69 = sfence }
  0x39   :  { %s71_s3 = sld [smem:[#allocation7]]  ;;  %s313_s17 = sld [smem:[#allocation7 + $0x1]]  ;;  %v525_v0 = vld [vmem:[#allocation3] sm:$0xff] }
  0x3a   :  { %s314_s18 = sld [smem:[#allocation7 + $0x2]]  ;;  %s315_s19 = sld [smem:[#allocation7 + $0x3]] }
  0x3b   :  { %s316_s20 = sld [smem:[#allocation7 + $0x4]]  ;;  %s519_s21 = sld [smem:[#allocation7 + $0x5]] }
  0x3c   :  { %s521_s22 = sld [smem:[#allocation7 + $0x6]]  ;;  %s523_s23 = sld [smem:[#allocation7 + $0x7]] }
  0x3d   :  { %s527_s24 = sld [smem:[#allocation7 + $0x8]]  ;;  %s529_s25 = sld [smem:[#allocation7 + $0x9]] }
  0x3e   :  { %s531_s26 = sld [smem:[#allocation7 + $0xa]]  ;;  %s533_s27 = sld [smem:[#allocation7 + $0xb]] }
  0x3f   :  { %s535_s2 = sld [smem:[#allocation7 + $0xc]]  ;;  %s537_s28 = sld [smem:[#allocation7 + $0xd]]  ;;  %v132_v1 = vstv %s71_s3  ;;  %v140_v2 = vstv %s313_s17 }
  0x40   :  { %s539_s29 = sld [smem:[#allocation7 + $0xe]]  ;;  %s541_s30 = sld [smem:[#allocation7 + $0xf]]  ;;  %v133_v3 = vmul.f32 %v132_v1, %v525_v0  ;;  %v148_v4 = vstv %s314_s18  ;;  %v156_v5 = vstv %s315_s19  ;;  %v141_v6 = vmul.f32 %v140_v2, %v525_v0 }
  0x41   :  { %s544_s6 = sld [smem:[#allocation7 + $0x10]]  ;;  %s546_s7 = sld [smem:[#allocation7 + $0x11]]  ;;  %v149_v7 = vmul.f32 %v148_v4, %v525_v0  ;;  %v164_v8 = vstv %s316_s20  ;;  %v172_v9 = vstv %s519_s21  ;;  %v157_v10 = vmul.f32 %v156_v5, %v525_v0 }
  0x42   :  { %s551_s8 = sld [smem:[#allocation7 + $0x12]]  ;;  %s553_s9 = sld [smem:[#allocation7 + $0x13]]  ;;  %v165_v11 = vmul.f32 %v164_v8, %v525_v0  ;;  %v180_v12 = vstv %s521_s22  ;;  %v188_v13 = vstv %s523_s23  ;;  %v173_v14 = vmul.f32 %v172_v9, %v525_v0 }
  0x43   :  { %s559_s1 = sld [smem:[#allocation8]]  ;;  %s561_s10 = sld [smem:[#allocation8 + $0x1]]  ;;  %v181_v15 = vmul.f32 %v180_v12, %v525_v0  ;;  %v196_v16 = vstv %s527_s24  ;;  %v204_v17 = vstv %s529_s25  ;;  %v189_v18 = vmul.f32 %v188_v13, %v525_v0 }
  0x44   :  { %s567_s11 = sld [smem:[#allocation8 + $0x2]]  ;;  %s569_s12 = sld [smem:[#allocation8 + $0x3]]  ;;  %v573_v19 = vmul.f32 %v196_v16, %v525_v0  ;;  %v212_v20 = vstv %s531_s26  ;;  %v220_v21 = vstv %s533_s27  ;;  %v582_v22 = vmul.f32 %v204_v17, %v525_v0 }
  0x45   :  { %s577_s13 = sld [smem:[#allocation8 + $0x4]]  ;;  %s579_s14 = sld [smem:[#allocation8 + $0x5]]  ;;  %v585_v23 = vmul.f32 %v212_v20, %v525_v0  ;;  %v228_v24 = vstv %s535_s2  ;;  %v236_v25 = vstv %s537_s28  ;;  %v221_v26 = vmul.f32 %v220_v21, %v525_v0 }
  0x46   :  { %s589_s15 = sld [smem:[#allocation8 + $0x6]]  ;;  %s591_s16 = sld [smem:[#allocation8 + $0x7]]  ;;  %v595_v27 = vmul.f32 %v228_v24, %v525_v0  ;;  %v244_v28 = vstv %s539_s29  ;;  %v252_v29 = vstv %s541_s30  ;;  %v604_v30 = vmul.f32 %v236_v25, %v525_v0 }
  0x47   :  { %s599_s0 = sld [smem:[#allocation8 + $0x8]]  ;;  %s601_s3 = sld [smem:[#allocation8 + $0x9]]  ;;  %v607_v31 = vmul.f32 %v244_v28, %v525_v0  ;;  %v260_v32 = vstv %s544_s6  ;;  %v268_v33 = vstv %s546_s7  ;;  %v616_v34 = vmul.f32 %v252_v29, %v525_v0 }
  0x48   :  { %s611_s17 = sld [smem:[#allocation8 + $0xa]]  ;;  %s613_s18 = sld [smem:[#allocation8 + $0xb]]  ;;  %v619_v35 = vmul.f32 %v260_v32, %v525_v0  ;;  %v622_v36 = vmul.f32 %v268_v33, %v525_v0  ;;  %v276_v37 = vstv %s551_s8  ;;  %v284_v41 = vstv %s553_s9 }
  0x49   :  { %s625_s19 = sld [smem:[#allocation8 + $0xc]]  ;;  %s627_s20 = sld [smem:[#allocation8 + $0xd]]  ;;  %v134_v38 = vstv %s559_s1  ;;  %v142_v39 = vstv %s561_s10  ;;  %v632_v40 = vmul.f32 %v276_v37, %v525_v0 }
  0x4a   :  { %v135_v42 = vadd.f32 %v134_v38, %v133_v3  ;;  %v143_v43 = vadd.f32 %v142_v39, %v141_v6  ;;  %v150_v44 = vstv %s567_s11  ;;  %v158_v45 = vstv %s569_s12  ;;  %s639_s21 = sld [smem:[#allocation10]]  ;;  %s641_s22 = sld [smem:[#allocation10 + $0x1]] }
  0x4b   :  { %v151_v46 = vadd.f32 %v150_v44, %v149_v7  ;;  %v159_v47 = vadd.f32 %v158_v45, %v157_v10  ;;  %v166_v48 = vstv %s577_s13  ;;  %v174_v49 = vstv %s579_s14  ;;  %s645_s23 = sld [smem:[#allocation10 + $0x2]]  ;;  %s647_s24 = sld [smem:[#allocation10 + $0x3]] }
  0x4c   :  { %v136_v50 = vmax.f32 %v135_v42, 0.0  ;;  %v144_v51 = vmax.f32 %v143_v43, 0.0  ;;  %v167_v52 = vadd.f32 %v166_v48, %v165_v11  ;;  %v175_v53 = vadd.f32 %v174_v49, %v173_v14  ;;  %s649_s25 = sld [smem:[#allocation10 + $0x4]]  ;;  %s651_s26 = sld [smem:[#allocation10 + $0x5]] }
  0x4d   :  { %v152_v54 = vmax.f32 %v151_v46, 0.0  ;;  %v160_v55 = vmax.f32 %v159_v47, 0.0  ;;  %v182_v56 = vstv %s589_s15  ;;  %v190_v57 = vstv %s591_s16  ;;  %s657_s27 = sld [smem:[#allocation10 + $0x6]]  ;;  %s659_s2 = sld [smem:[#allocation10 + $0x7]] }
  0x4e   :  { %v168_v58 = vmax.f32 %v167_v52, 0.0  ;;  %v176_v59 = vmax.f32 %v175_v53, 0.0  ;;  %v183_v60 = vadd.f32 %v182_v56, %v181_v15  ;;  %v191_v61 = vadd.f32 %v190_v57, %v189_v18  ;;  %s663_s28 = sld [smem:[#allocation10 + $0x8]]  ;;  %s665_s29 = sld [smem:[#allocation10 + $0x9]] }
  0x4f   :  { %v198_v62 = vstv %s599_s0  ;;  %v206_v63 = vstv %s601_s3  ;;  %v214_v1 = vstv %s611_s17  ;;  %v222_v2 = vstv %s613_s18  ;;  %s670_s30 = sld [smem:[#allocation10 + $0xa]]  ;;  %s672_s6 = sld [smem:[#allocation10 + $0xb]] }
  0x50   :  { %v184_v3 = vmax.f32 %v183_v60, 0.0  ;;  %v192_v4 = vmax.f32 %v191_v61, 0.0  ;;  %v199_v5 = vadd.f32 %v198_v62, %v573_v19  ;;  %v207_v6 = vadd.f32 %v206_v63, %v582_v22  ;;  %s676_s7 = sld [smem:[#allocation10 + $0xc]]  ;;  %s678_s8 = sld [smem:[#allocation10 + $0xd]] }
  0x51   :  { %v215_v7 = vadd.f32 %v214_v1, %v585_v23  ;;  %v223_v8 = vadd.f32 %v222_v2, %v221_v26  ;;  %v230_v9 = vstv %s625_s19  ;;  %v238_v10 = vstv %s627_s20  ;;  %s682_s1 = sld [smem:[#allocation8 + $0xe]]  ;;  %s684_s10 = sld [smem:[#allocation8 + $0xf]] }
  0x52   :  { %v200_v11 = vmax.f32 %v199_v5, 0.0  ;;  %v208_v12 = vmax.f32 %v207_v6, 0.0  ;;  %v231_v13 = vadd.f32 %v230_v9, %v595_v27  ;;  %v239_v14 = vadd.f32 %v238_v10, %v604_v30  ;;  %s688_s11 = sld [smem:[#allocation8 + $0x10]]  ;;  %s692_s12 = sld [smem:[#allocation10 + $0xe]] }
  0x53   :  { %v137_v15 = vstv %s639_s21  ;;  %v145_v16 = vstv %s641_s22  ;;  %v216_v17 = vmax.f32 %v215_v7, 0.0  ;;  %v224_v18 = vmax.f32 %v223_v8, 0.0  ;;  %s694_s13 = sld [smem:[#allocation10 + $0xf]]  ;;  %s698_s14 = sld [smem:[#allocation8 + $0x11]] }
  0x54   :  { %v138_v19 = vmul.f32 %v137_v15, %v136_v50  ;;  %v146_v20 = vmul.f32 %v145_v16, %v144_v51  ;;  %v153_v21 = vstv %s645_s23  ;;  %v161_v22 = vstv %s647_s24  ;;  %s700_s15 = sld [smem:[#allocation8 + $0x12]]  ;;  %s702_s16 = sld [smem:[#allocation10 + $0x10]] }
  0x55   :  { %v154_v23 = vmul.f32 %v153_v21, %v152_v54  ;;  %v162_v24 = vmul.f32 %v161_v22, %v160_v55  ;;  %v169_v25 = vstv %s649_s25  ;;  %v177_v26 = vstv %s651_s26  ;;  %s708_s0 = sld [smem:[#allocation10 + $0x11]]  ;;  %s711_s3 = sld [smem:[#allocation8 + $0x13]] }
  0x56   :  { %v170_v27 = vmul.f32 %v169_v25, %v168_v58  ;;  %v178_v28 = vmul.f32 %v177_v26, %v176_v59  ;;  %v185_v29 = vstv %s657_s27  ;;  %v193_v30 = vstv %s659_s2  ;;  %s713_s17 = sld [smem:[#allocation10 + $0x12]]  ;;  %s721_s18 = sld [smem:[#allocation10 + $0x13]] }
  0x57   :  { %v155_v32 = vadd.f32 %v154_v23, %v138_v19  ;;  %v163_v33 = vadd.f32 %v162_v24, %v146_v20  ;;  %v186_v37 = vmul.f32 %v185_v29, %v184_v3  ;;  %v194_v38 = vmul.f32 %v193_v30, %v192_v4  ;;  %s467_s20 = smov [#allocation11]  }
  0x58   :  { %v201_v39 = vstv %s663_s28  ;;  %v209_v42 = vstv %s665_s29  ;;  %v217_v43 = vstv %s670_s30  ;;  %v225_v44 = vstv %s672_s6  ;;  %s302_s21 = sshll.u32 %s467_s20, 4  ;;  %s303_s21 = int_to_ptr.vmem [resolvable:$true] %s302_s21 }
  0x59   :  { %v171_v45 = vadd.f32 %v170_v27, %v155_v32  ;;  %v179_v46 = vadd.f32 %v178_v28, %v163_v33  ;;  %v202_v47 = vmul.f32 %v201_v39, %v200_v11  ;;  %v210_v48 = vmul.f32 %v209_v42, %v208_v12  ;;  %s433_s22 = scalar_lea.vmem %s303_s21, 128  ;;  %p438_p10 = scmp.lt.s32.totalorder %s303_s21, %s303_s21 }
  0x5a   :  { %v218_v49 = vmul.f32 %v217_v43, %v216_v17  ;;  %v226_v50 = vmul.f32 %v225_v44, %v224_v18  ;;  %v232_v51 = vmax.f32 %v231_v13, 0.0  ;;  %v233_v52 = vstv %s676_s7  ;;  %p434_p9 = scmp.ne.s32.totalorder %s303_s21, %s433_s22  ;;  %p439_p11 = scmp.lt.s32.totalorder %s433_s22, %s433_s22 }
  0x5b   :  { %v187_v53 = vadd.f32 %v186_v37, %v171_v45  ;;  %v195_v54 = vadd.f32 %v194_v38, %v179_v46  ;;  %v240_v55 = vmax.f32 %v239_v14, 0.0  ;;  %v241_v56 = vstv %s678_s8 }
  0x5c   :  { %v234_v57 = vmul.f32 %v233_v52, %v232_v51  ;;  %v246_v58 = vstv %s682_s1  ;;  %v254_v59 = vstv %s684_s10  ;;  %v285_v60 = vmul.f32 %v284_v41, %v525_v0  ;;  %p440_p12 = por %p439_p11, %p438_p10 }
  0x5d   :  { %v203_v61 = vadd.f32 %v202_v47, %v187_v53  ;;  %v211_v62 = vadd.f32 %v210_v48, %v195_v54  ;;  %v242_v63 = vmul.f32 %v241_v56, %v240_v55  ;;  %v247_v1 = vadd.f32 %v246_v58, %v607_v31 }
  0x5e   :  { %v249_v2 = vstv %s692_s12  ;;  %v255_v3 = vadd.f32 %v254_v59, %v616_v34  ;;  %v257_v4 = vstv %s694_s13  ;;  %v262_v5 = vstv %s688_s11  ;;  %p441_p13 = pnand %p440_p12, %p434_p9 }
  0x5f   :  { %v219_v6 = vadd.f32 %v218_v49, %v203_v61  ;;  %v227_v7 = vadd.f32 %v226_v50, %v211_v62  ;;  %v248_v8 = vmax.f32 %v247_v1, 0.0  ;;  %v263_v0 = vadd.f32 %v262_v5, %v619_v35 }
  0x60   :  { %v256_v41 = vmax.f32 %v255_v3, 0.0  ;;  %v265_v9 = vstv %s702_s16  ;;  %v270_v10 = vstv %s698_s14  ;;  %v278_v11 = vstv %s700_s15 }
  0x61   :  { %v235_v12 = vadd.f32 %v234_v57, %v219_v6  ;;  %v243_v13 = vadd.f32 %v242_v63, %v227_v7  ;;  %v250_v31 = vmul.f32 %v249_v2, %v248_v8  ;;  %v264_v14 = vmax.f32 %v263_v0, 0.0 }
  0x62   :  { %v258_v34 = vmul.f32 %v257_v4, %v256_v41  ;;  %v271_v15 = vadd.f32 %v270_v10, %v622_v36  ;;  %v273_v16 = vstv %s708_s0  ;;  %v279_v17 = vadd.f32 %v278_v11, %v632_v40 }
  0x63   :  { %v251_v18 = vadd.f32 %v250_v31, %v235_v12  ;;  %v266_v19 = vmul.f32 %v265_v9, %v264_v14  ;;  %v281_v20 = vstv %s713_s17  ;;  %v286_v35 = vstv %s711_s3 }
  0x64   :  { %v259_v21 = vadd.f32 %v258_v34, %v243_v13  ;;  %v272_v22 = vmax.f32 %v271_v15, 0.0  ;;  %v280_v23 = vmax.f32 %v279_v17, 0.0  ;;  %v287_v24 = vadd.f32 %v286_v35, %v285_v60 }
  0x65   :  { %v267_v25 = vadd.f32 %v266_v19, %v251_v18  ;;  %v289_v26 = vstv %s721_s18  ;;  %v293_v40 = vstv %s757_s4 }
  0x66   :  { %v274_v27 = vmul.f32 %v273_v16, %v272_v22  ;;  %v282_v28 = vmul.f32 %v281_v20, %v280_v23  ;;  %v288_v29 = vmax.f32 %v287_v24, 0.0 }
  0x68   :  { %v275_v30 = vadd.f32 %v274_v27, %v259_v21  ;;  %v283_v32 = vadd.f32 %v282_v28, %v267_v25  ;;  %v290_v33 = vmul.f32 %v289_v26, %v288_v29 }
  0x6a   :  { %v291_v36 = vadd.f32 %v290_v33, %v275_v30 }
  0x6c   :  { %v292_v37 = vadd.f32 %v291_v36, %v283_v32 }
  0x6e   :  { %v294_v38 = vadd.f32 %v293_v40, %v292_v37 }
  0x70   :  { %295 = vst [vmem:[#allocation11] sm:$0xff] %v294_v38 }
  0x71   :  { %444 = shalt.err (!%p441_p13)
}
  0x72   :  { %s445_s25 = scalar_lea.hbm %s758_s5, 128 }
  0x73   :  { %p446_p0 = scmp.ne.s32.totalorder %s758_s5, %s445_s25  ;;  %p449_p1 = scmp.lt.u32.totalorder %s445_s25, %s758_s5 }
  0x75   :  { %p451_p2 = pnand %p449_p1, %p446_p0 }
  0x77   :  { %454 = shalt.err (!%p451_p2)
}
  0x78   :  { %305 = dma.vmem_to_hbm [thread:$0]  %s303_s21, 128, %s758_s5, [#allocation5]  }
  0x79   :  { %461 = dma.done.wait [#allocation5], 128  }
  0x7a   :  { %462 = vsyncadd [#allocation5], 4294967168 }
  0x7b   :  { %309 = vsyncpa [#allocation4], 1 }
  0x7c   :  { %310 = vsyncpa [#allocation5], 1 }
  0x7d   :  { %311 = vsyncpa [#allocation6], 1 }
  0x7e   :  { %312 = vsyncpa [#allocation9], 1 }

</bundles_post_ra>
